<compile_context>
chip_gen: v6e
topology: v6e:2x2x1
jax: 0.10.0
libtpu: 0.0.40
codegen_flags: <defaults>
</compile_context>

<pallas_src>
import functools

import jax
import jax.numpy as jnp
from jax.experimental import pallas as pl
from jax.experimental.pallas import tpu as pltpu


def masked_rank_linear_kernel(x_ref, bwt_ref, bb_ref, at_ref, out_ref, *, thresh):
    # x: (M, D) any float dtype; bwt: (D, RP) f32; bb: (1, RP) f32; at: (RP, N) f32.
    x = x_ref[...].astype(jnp.float32)                                   # in-kernel cast
    # o1 = B(x) = x @ B_w^T + bias                                       # (M, RP)
    o1 = jnp.dot(x, bwt_ref[...], preferred_element_type=jnp.float32) + bb_ref[...]
    # Keep rank components whose square exceeds the (static) threshold.  Zeroing the
    # masked o1 entries is equivalent to zeroing the matching A_t rows.
    xm = jnp.where((o1 * o1) >= thresh, o1, jnp.zeros_like(o1))          # (M, RP)
    # out = (masked A_t)^T @ o1  ==  xm @ A_t                            # (M, N)
    out_ref[...] = jnp.dot(xm, at_ref[...], preferred_element_type=jnp.float32)


def make_masked_rank_linear(B_weight, B_bias, A_t, thresh):
    """One-time setup (module init).

    B_weight: (R, D); B_bias: (R,); A_t: (R, N); thresh: scalar (static per module).
    Returns a jitted forward: x (beam, seq, D) any float dtype -> (beam, seq, N) f32.
    """
    R, D = B_weight.shape
    R2, N = A_t.shape
    assert R2 == R, "A_t rows must match B output rank"

    # ---- hoisted, one-time preprocessing (NOT on the per-call hot path) ----
    # Pad the rank dim to a lane-dense multiple of 128.  Zero-padded bwt columns and
    # bias entries make padded o1 slots exactly 0; zero-padded A_t rows make their
    # contribution exactly 0 regardless of the mask, so the output is unchanged.
    RP = ((R + 127) // 128) * 128
    bwt = jnp.zeros((D, RP), jnp.float32).at[:, :R].set(
        jnp.asarray(B_weight, jnp.float32).T)                 # (D, RP)
    bb = jnp.zeros((1, RP), jnp.float32).at[:, :R].set(
        jnp.asarray(B_bias, jnp.float32).reshape(1, R))       # (1, RP)
    at = jnp.zeros((RP, N), jnp.float32).at[:R, :].set(
        jnp.asarray(A_t, jnp.float32))                        # (RP, N)

    thresh_f = float(thresh)  # static: baked into the kernel, no SMEM operand.
    kernel = functools.partial(masked_rank_linear_kernel, thresh=thresh_f)

    @jax.jit
    def forward(x):
        beam, seq, d = x.shape
        assert d == D, f"expected last dim {D}, got {d}"
        M = beam * seq
        x2 = x.reshape(M, D)  # native dtype; cast happens inside the kernel.

        cost = pl.CostEstimate(
            flops=2 * M * (D * RP + RP * N),
            transcendentals=0,
            bytes_accessed=(x2.dtype.itemsize * M * D
                            + 4 * (D * RP + RP + RP * N + M * N)),
        )
        out = pl.pallas_call(
            kernel,
            out_shape=jax.ShapeDtypeStruct((M, N), jnp.float32),
            in_specs=[
                pl.BlockSpec(memory_space=pltpu.MemorySpace.VMEM),  # x   (M, D)
                pl.BlockSpec(memory_space=pltpu.MemorySpace.VMEM),  # bwt (D, RP)
                pl.BlockSpec(memory_space=pltpu.MemorySpace.VMEM),  # bb  (1, RP)
                pl.BlockSpec(memory_space=pltpu.MemorySpace.VMEM),  # at  (RP, N)
            ],
            out_specs=pl.BlockSpec(memory_space=pltpu.MemorySpace.VMEM),
            cost_estimate=cost,
        )(x2, bwt, bb, at)
        return out.reshape(beam, seq, N)

    return forward


def _reference(x, B_weight, B_bias, A_t, thresh):
    beam, seq, D = x.shape
    R, N = A_t.shape
    o1 = x.reshape(-1, D).astype(jnp.float32) @ jnp.asarray(B_weight, jnp.float32).T \
        + jnp.asarray(B_bias, jnp.float32)
    m = (o1 * o1) >= thresh
    return (jnp.where(m, o1, 0.0) @ jnp.asarray(A_t, jnp.float32)).reshape(beam, seq, N)


if __name__ == "__main__":
    key = jax.random.PRNGKey(0)
    # Small shapes consistent with the module: hidden D=32, low rank R=16, out N=128.
    D, R, N = 32, 16, 128
    k1, k2, k3, k4, k5 = jax.random.split(key, 5)

    B_weight = jax.random.normal(k2, (R, D), jnp.float32) * 0.1   # B: Linear(D -> R)
    B_bias = jax.random.normal(k3, (R,), jnp.float32) * 0.1
    A_t = jax.random.normal(k4, (R, N), jnp.float32) * 0.1        # A_t = A.weight.T, (R, N)
    thresh = 0.05

    forward = make_masked_rank_linear(B_weight, B_bias, A_t, thresh)

    # Case 1: the exact module shape (beam=1, seq=1), f32 input.
    x1 = jax.random.normal(k1, (1, 1, D), jnp.float32)
    out1 = jax.block_until_ready(forward(x1))
    ref1 = _reference(x1, B_weight, B_bias, A_t, thresh)
    assert out1.shape == (1, 1, N) and out1.dtype == jnp.float32
    assert jnp.allclose(out1, ref1, atol=1e-5), "kernel/reference mismatch (M=1)"

    # Case 2: batched beam/seq rows, bf16 input (native-dtype path + in-kernel cast).
    x2 = jax.random.normal(k5, (2, 4, D), jnp.float32).astype(jnp.bfloat16)
    out2 = jax.block_until_ready(forward(x2))
    ref2 = _reference(x2.astype(jnp.float32), B_weight, B_bias, A_t, thresh)
    assert out2.shape == (2, 4, N) and out2.dtype == jnp.float32
    assert jnp.allclose(out2, ref2, atol=2e-2), "kernel/reference mismatch (batched bf16)"

    print("KERNEL_OK")
</pallas_src>

<mosaic_0001>
module attributes {stable_mosaic.version = 11 : i64} {
  func.func @masked_rank_linear_kernel(%arg0: memref<1x32xf32, #tpu.memory_space<vmem>>, %arg1: memref<32x128xf32, #tpu.memory_space<vmem>>, %arg2: memref<1x128xf32, #tpu.memory_space<vmem>>, %arg3: memref<128x128xf32, #tpu.memory_space<vmem>>, %arg4: memref<1x128xf32, #tpu.memory_space<vmem>>) attributes {dimension_semantics = [], scalar_prefetch = 0 : i64, scratch_operands = 0 : i64, tpu.core_type = #tpu.core_type<tc>} {
    %c0 = arith.constant 0 : index
    %c0_0 = arith.constant 0 : index
    %0 = vector.load %arg0[%c0, %c0_0] : memref<1x32xf32, #tpu.memory_space<vmem>>, vector<1x32xf32>
    %c0_1 = arith.constant 0 : index
    %c0_2 = arith.constant 0 : index
    %1 = vector.load %arg1[%c0_1, %c0_2] : memref<32x128xf32, #tpu.memory_space<vmem>>, vector<32x128xf32>
    %cst = arith.constant dense<0.000000e+00> : vector<1x128xf32>
    %2 = tpu.matmul %0, %1, %cst {dimension_numbers = #tpu.dot_dimension_numbers<[1], [0], [0], [1], [0, 0, 1, 1], [], []>} : vector<1x32xf32>, vector<32x128xf32>, vector<1x128xf32> -> vector<1x128xf32>
    %c0_3 = arith.constant 0 : index
    %c0_4 = arith.constant 0 : index
    %3 = vector.load %arg2[%c0_3, %c0_4] : memref<1x128xf32, #tpu.memory_space<vmem>>, vector<1x128xf32>
    %4 = arith.addf %2, %3 : vector<1x128xf32>
    %5 = arith.mulf %4, %4 : vector<1x128xf32>
    %cst_5 = arith.constant 5.000000e-02 : f32
    %6 = vector.broadcast %cst_5 : f32 to vector<1x128xf32>
    %7 = arith.cmpf oge, %5, %6 : vector<1x128xf32>
    %cst_6 = arith.constant 0.000000e+00 : f32
    %8 = vector.broadcast %cst_6 : f32 to vector<1x128xf32>
    %9 = arith.select %7, %4, %8 : vector<1x128xi1>, vector<1x128xf32>
    %c0_7 = arith.constant 0 : index
    %c0_8 = arith.constant 0 : index
    %10 = vector.load %arg3[%c0_7, %c0_8] : memref<128x128xf32, #tpu.memory_space<vmem>>, vector<128x128xf32>
    %cst_9 = arith.constant dense<0.000000e+00> : vector<1x128xf32>
    %11 = tpu.matmul %9, %10, %cst_9 {dimension_numbers = #tpu.dot_dimension_numbers<[1], [0], [0], [1], [0, 0, 1, 1], [], []>} : vector<1x128xf32>, vector<128x128xf32>, vector<1x128xf32> -> vector<1x128xf32>
    %c0_10 = arith.constant 0 : index
    %c0_11 = arith.constant 0 : index
    %12 = vector.load %arg4[%c0_10, %c0_11] : memref<1x128xf32, #tpu.memory_space<vmem>>, vector<1x128xf32>
    tpu.vector_store %arg4[%c0_10, %c0_11], %11 {strides = array<i32>} : memref<1x128xf32, #tpu.memory_space<vmem>>, vector<1x128xf32>,
    return
  }
}

</mosaic_0001>

<bundles_post_ra>
// kernel: forward.1
= control target key start
LH: loop header
LB: loop body
LE: loop exit
PB: predicated region body
PF: predicated region fallthrough
CT: control target
= control target key end

     0   :  { %9 = vsyncpa [#allocation3], 0  ;;  %s444_s0 = inlined_call_operand.vmem [shape: f32[1,32], index: 0, kind: input, shape index: {}]   ;;  %s445_s1 = inlined_call_operand.hbm [shape: f32[32,128], index: 1, kind: input, shape index: {}]   ;;  %s446_s2 = inlined_call_operand.vmem [shape: f32[1,128], index: 2, kind: input, shape index: {}]   ;;  %s447_s3 = inlined_call_operand.hbm [shape: f32[128,128], index: 3, kind: input, shape index: {}]   ;;  %s448_s4 = inlined_call_operand.hbm [shape: f32[1,128], index: 4, kind: output, shape index: {}]  }
   0x1   :  { %10 = vsyncpa [#allocation6], 0 }
   0x2   :  { %11 = vsyncpa [#allocation4], 0  ;;  %s375_s15 = smov [#allocation2]  }
   0x3   :  { %s19_s16 = sshll.u32 %s375_s15, 4  ;;  %s20_s16 = int_to_ptr.vmem [resolvable:$true] %s19_s16 }
   0x4   :  { %s317_s17 = scalar_lea.vmem %s20_s16, 512  ;;  %p322_p1 = scmp.lt.s32.totalorder %s20_s16, %s20_s16 }
   0x5   :  { %p318_p0 = scmp.ne.s32.totalorder %s20_s16, %s317_s17  ;;  %p323_p2 = scmp.lt.s32.totalorder %s317_s17, %s317_s17 }
   0x7   :  { %p324_p3 = por %p323_p2, %p322_p1 }
   0x9   :  { %p325_p4 = pnand %p324_p3, %p318_p0 }
   0xb   :  { %328 = shalt.err (!%p325_p4)
}
   0xc   :  { %s376_s18 = smov 128   ;;  %s377_s19 = smov 8  }
   0xd   :  { %25 = dma.hbm_to_vmem [thread:$0]  %s445_s1, 512, %s20_s16, [#allocation3], %s376_s18, %s376_s18, %s377_s19  }
   0xe   :  { %s378_s22 = smov [#allocation5]  }
   0xf   :  { %s33_s23 = sshll.u32 %s378_s22, 4  ;;  %s34_s23 = int_to_ptr.vmem [resolvable:$true] %s33_s23 }
  0x10   :  { %s337_s24 = scalar_lea.vmem %s34_s23, 2048  ;;  %p342_p6 = scmp.lt.s32.totalorder %s34_s23, %s34_s23 }
  0x11   :  { %p338_p5 = scmp.ne.s32.totalorder %s34_s23, %s337_s24  ;;  %p343_p7 = scmp.lt.s32.totalorder %s337_s24, %s337_s24 }
  0x13   :  { %p344_p8 = por %p343_p7, %p342_p6 }
  0x15   :  { %p345_p9 = pnand %p344_p8, %p338_p5 }
  0x17   :  { %348 = shalt.err (!%p345_p9)
}
  0x18   :  { %39 = dma.hbm_to_vmem [thread:$0]  %s447_s3, 2048, %s34_s23, [#allocation6], %s376_s18, %s376_s18, %s377_s19  }
  0x19   :  { %369 = dma.done.wait [#allocation3], 512  }
  0x1a   :  { %370 = vsyncadd [#allocation3], 4294966784 }
  0x1b   :  { %371 = dma.done.wait [#allocation6], 2048  }
  0x1c   :  { %372 = vsyncadd [#allocation6], 4294965248  ;;  %v379_v0 = vmov 0.0   ;;  %vm380_vm0 = vmmov 0   ;;  %v50_v1 = vld [vmem:[#allocation2 + $0x18] sm:$0xff]  ;;  %v49_v2 = vld [vmem:[#allocation2 + $0x10] sm:$0xff] }
  0x1d   :  { %256 = vmatprep.subr.mxu0 %v379_v0  ;;  %264 = vmatprep.mubr.msk.f32.mxu0 %vm380_vm0, %v379_v0  ;;  %v144_v3 = vld [vmem:[#allocation5 + $0x78] sm:$0xff]  ;;  %v48_v4 = vld [vmem:[#allocation2 + $0x8] sm:$0xff]  ;;  %v143_v5 = vld [vmem:[#allocation5 + $0x70] sm:$0xff]  ;;  %vm52_vm1 = vcmask 261120   ;;  %s381_s28 = smov [#allocation7]  }
  0x1e   :  { %267 = vmatprep.subr.mxu1 %v379_v0  ;;  %299 = vmatprep.mubr.msk.f32.mxu1 %vm380_vm0, %v379_v0  ;;  %v142_v6 = vld [vmem:[#allocation5 + $0x68] sm:$0xff]  ;;  %v47_v7 = vld [vmem:[#allocation2] sm:$0xff]  ;;  %v140_v10 = vld [vmem:[#allocation5 + $0x58] sm:$0xff]  ;;  %s222_s29 = sshll.u32 %s381_s28, 4  ;;  %s223_s29 = int_to_ptr.vmem [resolvable:$true] %s222_s29 }
  0x1f   :  { %257 = vmatpush3.msra.mxu0 %v50_v1  ;;  %268 = vmatpush3.msra.mxu1 %v144_v3  ;;  %v46_v8 = vld [vmem:[%s444_s0] sm:$0x1]  ;;  %v139_v11 = vld [vmem:[#allocation5 + $0x50] sm:$0xff]  ;;  %v138_v12 = vld [vmem:[#allocation5 + $0x48] sm:$0xff]  ;;  %s349_s30 = scalar_lea.vmem %s223_s29, 16  ;;  %s353_s5 = scalar_lea.vmem %s223_s29, 32 }
  0x20   :  { %258 = vmatprep.subr.mxu0 %v379_v0  ;;  %269 = vmatprep.subr.mxu1 %v379_v0  ;;  %v141_v9 = vld [vmem:[#allocation5 + $0x60] sm:$0xff]  ;;  %v136_v14 = vld [vmem:[#allocation5 + $0x38] sm:$0xff]  ;;  %v135_v15 = vld [vmem:[#allocation5 + $0x30] sm:$0xff]  ;;  %p350_p10 = scmp.ne.s32.totalorder %s223_s29, %s349_s30  ;;  %p354_p11 = scmp.lt.s32.totalorder %s223_s29, %s223_s29 }
  0x21   :  { %259 = vmatpush3.msra.mxu0 %v49_v2  ;;  %270 = vmatpush3.msra.mxu1 %v143_v5  ;;  %v137_v13 = vld [vmem:[#allocation5 + $0x40] sm:$0xff]  ;;  %v134_v16 = vld [vmem:[#allocation5 + $0x28] sm:$0xff]  ;;  %v132_v18 = vld [vmem:[#allocation5 + $0x18] sm:$0xff]  ;;  %p355_p12 = scmp.lt.s32.totalorder %s353_s5, %s349_s30 }
  0x22   :  { %260 = vmatprep.subr.mxu0 %v379_v0  ;;  %271 = vmatprep.subr.mxu1 %v379_v0  ;;  %v133_v17 = vld [vmem:[#allocation5 + $0x20] sm:$0xff]  ;;  %v131_v19 = vld [vmem:[#allocation5 + $0x10] sm:$0xff]  ;;  %v130_v20 = vld [vmem:[#allocation5 + $0x8] sm:$0xff] }
  0x23   :  { %261 = vmatpush3.msra.mxu0 %v48_v4  ;;  %272 = vmatpush3.msra.mxu1 %v142_v6  ;;  %v129_v21 = vld [vmem:[#allocation5] sm:$0xff]  ;;  %p356_p13 = por %p355_p12, %p354_p11 }
  0x24   :  { %262 = vmatprep.subr.mxu0 %v379_v0  ;;  %273 = vmatprep.subr.mxu1 %v379_v0  ;;  %v51_v22 = vld [vmem:[%s446_s2] sm:$0x1] }
  0x25   :  { %263 = vmatpush3.msra.mxu0 %v47_v7  ;;  %274 = vmatpush3.msra.mxu1 %v141_v9  ;;  %p357_p0 = pnand %p356_p13, %p350_p10 }
  0x26   :  { %265 = vmatmul.mubr.msk.f32.vlgmr.msra.gmra.mxu0 %vm52_vm1, %v46_v8  ;;  %275 = vmatprep.subr.mxu1 %v379_v0 }
  0x27   :  { %276 = vmatpush3.msra.mxu1 %v140_v10 }
  0x28   :  { %277 = vmatprep.subr.mxu1 %v379_v0 }
  0x29   :  { %278 = vmatpush3.msra.mxu1 %v139_v11 }
  0x2a   :  { %279 = vmatprep.subr.mxu1 %v379_v0 }
  0x2b   :  { %280 = vmatpush3.msra.mxu1 %v138_v12 }
  0x2c   :  { %281 = vmatprep.subr.mxu1 %v379_v0 }
  0x2d   :  { %282 = vmatpush3.msra.mxu1 %v137_v13 }
  0x2e   :  { %283 = vmatprep.subr.mxu1 %v379_v0 }
  0x2f   :  { %284 = vmatpush3.msra.mxu1 %v136_v14 }
  0x30   :  { %285 = vmatprep.subr.mxu1 %v379_v0 }
  0x31   :  { %286 = vmatpush3.msra.mxu1 %v135_v15 }
  0x32   :  { %287 = vmatprep.subr.mxu1 %v379_v0 }
  0x33   :  { %288 = vmatpush3.msra.mxu1 %v134_v16 }
  0x34   :  { %289 = vmatprep.subr.mxu1 %v379_v0 }
  0x35   :  { %290 = vmatpush3.msra.mxu1 %v133_v17 }
  0x36   :  { %291 = vmatprep.subr.mxu1 %v379_v0 }
  0x37   :  { %292 = vmatpush3.msra.mxu1 %v132_v18 }
  0x38   :  { %293 = vmatprep.subr.mxu1 %v379_v0 }
  0x39   :  { %294 = vmatpush3.msra.mxu1 %v131_v19 }
  0x3a   :  { %295 = vmatprep.subr.mxu1 %v379_v0 }
  0x3b   :  { %296 = vmatpush3.msra.mxu1 %v130_v20 }
  0x3c   :  { %297 = vmatprep.subr.mxu1 %v379_v0 }
  0x3d   :  { %298 = vmatpush3.msra.mxu1 %v129_v21 }
  0xe6   :  { %v122_v23 = vpop.f32.mrf.mxu0 }
  0xe7   :  { %v123_v24 = vadd.f32 %v122_v23, %v51_v22 }
  0xe8   :  { %v266_v25 = vpop.f32.mrf.mxu0 }
  0xe9   :  { %v126_v26 = vmul.f32 %v123_v24, %v123_v24 }
  0xeb   :  { %vm127_vm2 = vcmp.ge.f32.partialorder %v126_v26, 0.05 }
  0xec   :  { %300 = vmatmul.mubr.msk.f32.vlgmr.msra.gmra.mxu1 %vm127_vm2, %v123_v24 }
 0x1ac   :  { %v211_v27 = vpop.f32.mrf.mxu1 }
 0x1ad   :  { %215 = vst [vmem:[#allocation7] sm:$0x1] %v211_v27 }
 0x1ae   :  { %v301_v28 = vpop.f32.mrf.mxu1 }
 0x1af   :  { %360 = shalt.err (!%p357_p0)
}
 0x1b0   :  { %225 = dma.vmem_to_hbm [thread:$0]  %s223_s29, 16, %s448_s4, [#allocation4]  }
 0x1b1   :  { %373 = dma.done.wait [#allocation4], 16  }
 0x1b2   :  { %374 = vsyncadd [#allocation4], 4294967280 }
 0x1b3   :  { %229 = vsyncpa [#allocation3], 1 }
 0x1b4   :  { %230 = vsyncpa [#allocation6], 1 }
 0x1b5   :  { %231 = vsyncpa [#allocation4], 1 }

</bundles_post_ra>
